<compile_context>
chip_gen: v6e
topology: v6e:2x2x1
jax: 0.10.0
libtpu: 0.0.40
codegen_flags: <defaults>
</compile_context>

<pallas_src>
import jax
import jax.numpy as jnp
from jax.experimental import pallas as pl
from jax.experimental.pallas import tpu as pltpu


def _round_up(x, m):
    return ((x + m - 1) // m) * m


# ----------------------------------------------------------------------------
# Pallas kernel: fused 2-layer MLP feature extractor + fused predictor head
# ----------------------------------------------------------------------------
def _box_head_kernel(x_ref, w6_ref, b6_ref, w7_ref, b7_ref, wh_ref, bh_ref,
                     feat_ref, head_ref):
    # x tile: (tm, Din_p) bf16; weights resident bf16; biases f32.
    x = x_ref[...]
    h = jnp.dot(x, w6_ref[...], preferred_element_type=jnp.float32)
    h = jnp.maximum(h + b6_ref[...], 0.0)                      # fc6 + ReLU (f32)
    h = jnp.dot(h.astype(jnp.bfloat16), w7_ref[...],
                preferred_element_type=jnp.float32)
    h = jnp.maximum(h + b7_ref[...], 0.0)                      # fc7 + ReLU (f32)
    feat_ref[...] = h.astype(feat_ref.dtype)                   # bf16 "x" (returned)
    # fused cls_score + bbox_pred: single lane-dense (128-multiple) output tile
    head_ref[...] = (jnp.dot(h.astype(jnp.bfloat16), wh_ref[...],
                             preferred_element_type=jnp.float32)
                     + bh_ref[...]).astype(head_ref.dtype)


def _physical_vmem_bytes():
    try:
        return int(pltpu.get_tpu_info().vmem_capacity_bytes)
    except Exception:
        return 64 * 1024 * 1024          # conservative (v7x per-TC)


def box_head_mlp_predictor(x_flat, params, *, tile_rows=512):
    """x_flat: (N, C*P*P) f32/bf16.  params = (w6,b6,w7,b7,wc,bc,wb,bb), W as (in,out).
    Returns (features (N,Dhid) bf16, class_logits (N,Ncls) bf16,
             box_regression (N,Nbox) bf16)."""
    w6, b6, w7, b7, wc, bc, wb, bb = params
    n, d_in = x_flat.shape
    d_hid = w6.shape[1]
    n_cls = wc.shape[1]
    n_box = wb.shape[1]

    # --- pad to MXU / vreg friendly sizes: lane = 128, sublane = 8/16 -------
    d_in_p = _round_up(d_in, 128)
    d_hid_p = _round_up(d_hid, 128)
    d_head = n_cls + n_box
    d_head_p = _round_up(d_head, 128)

    f32, bf16 = jnp.float32, jnp.bfloat16

    # Row tile: multiple of 16 (bf16 sublane packing), multiple of 128 when N
    # is large (clean v5e MXU passes and >=2 grid steps for v7x megacore).
    tm = min(tile_rows, _round_up(n, 16))
    if n >= 128:
        tm = max(128, (tm // 128) * 128)

    # --- VMEM plan: shrink tm until it fits ~90% of physical VMEM ----------
    w_bytes = 2 * (d_in_p * d_hid_p + d_hid_p * d_hid_p + d_hid_p * d_head_p)
    b_bytes = 4 * 8 * (2 * d_hid_p + d_head_p)     # f32 biases, sublane-padded

    def _need(tm_):
        x_buf = 2 * tm_ * d_in_p * 2               # bf16 x, double-buffered
        feat_buf = 2 * tm_ * d_hid_p * 2           # bf16 out, double-buffered
        head_buf = 2 * tm_ * d_head_p * 2
        interm = 2 * tm_ * d_hid_p * 4             # f32 h temporaries
        return w_bytes + b_bytes + x_buf + feat_buf + head_buf + interm

    phys = _physical_vmem_bytes()
    budget = int(phys * 0.85)
    while tm > 16 and _need(tm) > budget:
        tm = max(16, tm // 2)
    vmem_limit = min(int(phys * 0.9), max(_need(tm) + (16 << 20), 48 << 20))

    n_p = _round_up(n, tm)
    grid = (n_p // tm,)

    def pad2(a, r, c, dt):
        a = a.astype(dt)
        return jnp.pad(a, ((0, r - a.shape[0]), (0, c - a.shape[1])))

    x_p = pad2(x_flat, n_p, d_in_p, bf16)            # activations stream in bf16
    w6_p = pad2(w6, d_in_p, d_hid_p, bf16)           # weights resident in VMEM
    w7_p = pad2(w7, d_hid_p, d_hid_p, bf16)
    wh_p = pad2(jnp.concatenate([wc, wb], axis=1), d_hid_p, d_head_p, bf16)
    b6_p = pad2(b6.reshape(1, -1), 1, d_hid_p, f32)
    b7_p = pad2(b7.reshape(1, -1), 1, d_hid_p, f32)
    bh_p = pad2(jnp.concatenate([bc.reshape(1, -1), bb.reshape(1, -1)], axis=1),
                1, d_head_p, f32)

    flops = 2 * n_p * (d_in_p * d_hid_p + d_hid_p * d_hid_p + d_hid_p * d_head_p)
    bytes_accessed = (x_p.size * 2
                      + (w6_p.size + w7_p.size + wh_p.size) * 2
                      + (b6_p.size + b7_p.size + bh_p.size) * 4
                      + n_p * (d_hid_p + d_head_p) * 2)          # bf16 outputs

    def _call(fast):
        if fast:
            def resident(a):                 # weight/bias: one DMA, single buffer
                nd = a.ndim
                return pl.BlockSpec(a.shape, lambda i: (0,) * nd,
                                    pipeline_mode=pl.Buffered(1))
            allow_fusion = [True] + [False] * 6   # fuse pad/convert into x DMA
        else:
            def resident(a):
                nd = a.ndim
                return pl.BlockSpec(a.shape, lambda i: (0,) * nd)
            allow_fusion = None
        return pl.pallas_call(
            _box_head_kernel,
            out_shape=(jax.ShapeDtypeStruct((n_p, d_hid_p), bf16),
                       jax.ShapeDtypeStruct((n_p, d_head_p), bf16)),
            grid_spec=pltpu.PrefetchScalarGridSpec(
                num_scalar_prefetch=0,
                grid=grid,
                in_specs=[
                    pl.BlockSpec((tm, d_in_p), lambda i: (i, 0)),   # stream x tiles
                    resident(w6_p), resident(b6_p),
                    resident(w7_p), resident(b7_p),
                    resident(wh_p), resident(bh_p),
                ],
                out_specs=(
                    pl.BlockSpec((tm, d_hid_p), lambda i: (i, 0)),
                    pl.BlockSpec((tm, d_head_p), lambda i: (i, 0)),
                ),
            ),
            compiler_params=pltpu.CompilerParams(
                dimension_semantics=("parallel",),    # megacore sharding on v7x
                vmem_limit_bytes=vmem_limit,
                allow_input_fusion=allow_fusion,
            ),
            cost_estimate=pl.CostEstimate(flops=flops, transcendentals=0,
                                          bytes_accessed=bytes_accessed),
        )(x_p, w6_p, b6_p, w7_p, b7_p, wh_p, bh_p)

    try:
        feat_p, head_p = _call(True)
        jax.block_until_ready((feat_p, head_p))
    except Exception:
        # Fallback for JAX builds without Buffered(1)/allow_input_fusion support.
        feat_p, head_p = _call(False)

    feat = feat_p[:n, :d_hid]
    class_logits = head_p[:n, :n_cls]
    box_regression = head_p[:n, n_cls:n_cls + n_box]
    return feat, class_logits, box_regression


# ----------------------------------------------------------------------------
# ROIAlign pooler (plain-JAX glue; per-ROI dynamic gather + bilinear interp)
# ----------------------------------------------------------------------------
def _bilinear_sample(feat, ys, xs):
    """feat: (C,H,W); ys, xs: (K,) sample coords. Returns (C, K)."""
    C, H, W = feat.shape
    ys = jnp.clip(ys, 0.0, H - 1.0)
    xs = jnp.clip(xs, 0.0, W - 1.0)
    y0 = jnp.floor(ys).astype(jnp.int32)
    x0 = jnp.floor(xs).astype(jnp.int32)
    y1 = jnp.clip(y0 + 1, 0, H - 1)
    x1 = jnp.clip(x0 + 1, 0, W - 1)
    ly = ys - y0.astype(jnp.float32)
    lx = xs - x0.astype(jnp.float32)
    hy, hx = 1.0 - ly, 1.0 - lx

    def g(yi, xi):
        return feat[:, yi, xi]           # (C, K)

    return (g(y0, x0) * (hy * hx) + g(y0, x1) * (hy * lx)
            + g(y1, x0) * (ly * hx) + g(y1, x1) * (ly * lx))


def roi_align(features, rois, batch_idx, output_size=4, sampling_ratio=2,
              spatial_scale=1.0):
    """features: (B,C,H,W); rois: (N,4) [x1,y1,x2,y2]; batch_idx: (N,) int32.
    Returns pooled (N, C, output_size, output_size)."""
    # TODO(synk): multi-level FPN pooler (LevelMapper) and exact border/offset
    #             handling of maskrcnn_benchmark ROIAlign not reproduced.
    def one_roi(roi, b):
        feat = features[b]                               # (C,H,W)
        x1, y1, x2, y2 = roi * spatial_scale
        roi_w = jnp.maximum(x2 - x1, 1.0)
        roi_h = jnp.maximum(y2 - y1, 1.0)
        bin_w = roi_w / output_size
        bin_h = roi_h / output_size
        sr = sampling_ratio
        sub = (jnp.arange(sr, dtype=jnp.float32) + 0.5) / sr      # (sr,)
        by = jnp.arange(output_size, dtype=jnp.float32)
        ys = (y1 + (by[:, None] + sub[None, :]) * bin_h).reshape(-1)  # (P*sr,)
        xs = (x1 + (by[:, None] + sub[None, :]) * bin_w).reshape(-1)
        yy = jnp.repeat(ys, xs.shape[0])                          # (P*sr*P*sr,)
        xx = jnp.tile(xs, ys.shape[0])
        samples = _bilinear_sample(feat, yy, xx)                  # (C, P*sr*P*sr)
        C = feat.shape[0]
        samples = samples.reshape(C, output_size, sr, output_size, sr)
        return samples.mean(axis=(2, 4))                          # (C, P, P)

    return jax.vmap(one_roi)(rois, batch_idx)


# ----------------------------------------------------------------------------
# ROIBoxHead forward (inference path)
# ----------------------------------------------------------------------------
def roi_box_head_forward(features, proposals, batch_idx, params, pooled_size=4):
    pooled = roi_align(features, proposals, batch_idx,
                       output_size=pooled_size)                   # (N, C, P, P)
    n = pooled.shape[0]
    # NCHW flatten is a contiguous reshape; cast to bf16 here so the padded
    # activations never make an extra f32 HBM round-trip before the kernel.
    x_flat = pooled.reshape(n, -1).astype(jnp.bfloat16)
    x, class_logits, box_regression = box_head_mlp_predictor(x_flat, params)
    # TODO(synk): post_processor (softmax + box decoding + per-class NMS) is
    #             data-dependent box bookkeeping with no clean Pallas mapping.
    # TODO(synk): loss_evaluator / proposal subsampling (training-only) omitted.
    result = (class_logits, box_regression)
    losses = {}
    return x, result, losses


# Pure-JAX reference of the MLP/predictor path (for correctness check).
def _ref_mlp(x, params):
    w6, b6, w7, b7, wc, bc, wb, bb = params
    h = jnp.maximum(x @ w6 + b6, 0.0)
    h = jnp.maximum(h @ w7 + b7, 0.0)
    return h, h @ wc + bc, h @ wb + bb


if __name__ == "__main__":
    key = jax.random.PRNGKey(0)
    k_feat, k_box, k_w6, k_w7, k_wc, k_wb = jax.random.split(key, 6)

    # Small synthetic shapes
    B, C, H, W = 2, 4, 16, 16          # feature maps (NCHW)
    rois_per_img = 8
    N = B * rois_per_img
    P = 4                              # pooler resolution
    D_in = C * P * P                   # 64
    D_hid = 32                         # representation size (fc6/fc7)
    NUM_CLASSES = 8

    features = jax.random.normal(k_feat, (B, C, H, W), dtype=jnp.float32)

    # Deterministic random proposal boxes [x1,y1,x2,y2] inside the 16x16 map
    c0 = jax.random.uniform(k_box, (N, 2), minval=0.0, maxval=float(W) - 5.0)
    wh = jax.random.uniform(jax.random.fold_in(k_box, 1), (N, 2),
                            minval=2.0, maxval=5.0)
    proposals = jnp.concatenate([c0, c0 + wh], axis=-1)           # (N, 4)
    batch_idx = jnp.repeat(jnp.arange(B, dtype=jnp.int32), rois_per_img)

    # Parameters stored as (in, out) so the kernel computes x @ W + b.
    def init(k, shape, scale):
        return scale * jax.random.normal(k, shape, dtype=jnp.float32)

    params = (
        init(k_w6, (D_in, D_hid), 0.05), jnp.zeros((1, D_hid), jnp.float32),   # fc6
        init(k_w7, (D_hid, D_hid), 0.05), jnp.zeros((1, D_hid), jnp.float32),  # fc7
        init(k_wc, (D_hid, NUM_CLASSES), 0.01),
        jnp.zeros((1, NUM_CLASSES), jnp.float32),                              # cls_score
        init(k_wb, (D_hid, NUM_CLASSES * 4), 0.001),
        jnp.zeros((1, NUM_CLASSES * 4), jnp.float32),                          # bbox_pred
    )

    x, (class_logits, box_regression), losses = roi_box_head_forward(
        features, proposals, batch_idx, params, pooled_size=P)
    jax.block_until_ready((x, class_logits, box_regression))

    assert x.shape == (N, D_hid)
    assert class_logits.shape == (N, NUM_CLASSES)
    assert box_regression.shape == (N, NUM_CLASSES * 4)
    assert losses == {}

    # Correctness check vs pure-JAX reference (bf16 MXU inputs/outputs -> loose tol).
    pooled = roi_align(features, proposals, batch_idx, output_size=P)
    x_ref, cls_ref, box_ref = _ref_mlp(pooled.reshape(N, -1), params)
    assert jnp.allclose(x.astype(jnp.float32), x_ref, rtol=5e-2, atol=5e-2)
    assert jnp.allclose(class_logits.astype(jnp.float32), cls_ref,
                        rtol=5e-2, atol=5e-2)
    assert jnp.allclose(box_regression.astype(jnp.float32), box_ref,
                        rtol=5e-2, atol=5e-2)

    print("KERNEL_OK")
</pallas_src>

<mosaic_0001>
module attributes {stable_mosaic.version = 11 : i64} {
  func.func @_box_head_kernel(%arg0: i32, %arg1: memref<16x128xbf16, #tpu.memory_space<vmem>>, %arg2: memref<128x128xbf16, #tpu.memory_space<vmem>>, %arg3: memref<1x128xf32, #tpu.memory_space<vmem>>, %arg4: memref<128x128xbf16, #tpu.memory_space<vmem>>, %arg5: memref<1x128xf32, #tpu.memory_space<vmem>>, %arg6: memref<128x128xbf16, #tpu.memory_space<vmem>>, %arg7: memref<1x128xf32, #tpu.memory_space<vmem>>, %arg8: memref<16x128xbf16, #tpu.memory_space<vmem>>, %arg9: memref<16x128xbf16, #tpu.memory_space<vmem>>) attributes {dimension_semantics = [#tpu.dimension_semantics<parallel>], iteration_bounds = array<i64: 1>, scalar_prefetch = 0 : i64, scratch_operands = 0 : i64, tpu.core_type = #tpu.core_type<tc>, window_params = [{transform_indices = @transform_0, window_bounds = array<i64: 16, 128>}, {pipeline_mode = #tpu.pipeline_mode<synchronous>, transform_indices = @transform_1, window_bounds = array<i64: 128, 128>}, {pipeline_mode = #tpu.pipeline_mode<synchronous>, transform_indices = @transform_2, window_bounds = array<i64: 1, 128>}, {pipeline_mode = #tpu.pipeline_mode<synchronous>, transform_indices = @transform_3, window_bounds = array<i64: 128, 128>}, {pipeline_mode = #tpu.pipeline_mode<synchronous>, transform_indices = @transform_4, window_bounds = array<i64: 1, 128>}, {pipeline_mode = #tpu.pipeline_mode<synchronous>, transform_indices = @transform_5, window_bounds = array<i64: 128, 128>}, {pipeline_mode = #tpu.pipeline_mode<synchronous>, transform_indices = @transform_6, window_bounds = array<i64: 1, 128>}, {transform_indices = @transform_7, window_bounds = array<i64: 16, 128>}, {transform_indices = @transform_8, window_bounds = array<i64: 16, 128>}]} {
    %c0 = arith.constant 0 : index
    %c0_0 = arith.constant 0 : index
    %0 = vector.load %arg1[%c0, %c0_0] : memref<16x128xbf16, #tpu.memory_space<vmem>>, vector<16x128xbf16>
    %c0_1 = arith.constant 0 : index
    %c0_2 = arith.constant 0 : index
    %1 = vector.load %arg2[%c0_1, %c0_2] : memref<128x128xbf16, #tpu.memory_space<vmem>>, vector<128x128xbf16>
    %cst = arith.constant dense<0.000000e+00> : vector<16x128xf32>
    %2 = tpu.matmul %0, %1, %cst {dimension_numbers = #tpu.dot_dimension_numbers<[1], [0], [0], [1], [0, 0, 1, 1], [], []>} : vector<16x128xbf16>, vector<128x128xbf16>, vector<16x128xf32> -> vector<16x128xf32>
    %c0_3 = arith.constant 0 : index
    %c0_4 = arith.constant 0 : index
    %3 = vector.load %arg3[%c0_3, %c0_4] : memref<1x128xf32, #tpu.memory_space<vmem>>, vector<1x128xf32>
    %4 = vector.broadcast %3 : vector<1x128xf32> to vector<16x128xf32>
    %5 = arith.addf %2, %4 : vector<16x128xf32>
    %cst_5 = arith.constant 0.000000e+00 : f32
    %6 = vector.broadcast %cst_5 : f32 to vector<16x128xf32>
    %7 = arith.maximumf %5, %6 : vector<16x128xf32>
    %8 = arith.truncf %7 : vector<16x128xf32> to vector<16x128xbf16>
    %c0_6 = arith.constant 0 : index
    %c0_7 = arith.constant 0 : index
    %9 = vector.load %arg4[%c0_6, %c0_7] : memref<128x128xbf16, #tpu.memory_space<vmem>>, vector<128x128xbf16>
    %cst_8 = arith.constant dense<0.000000e+00> : vector<16x128xf32>
    %10 = tpu.matmul %8, %9, %cst_8 {dimension_numbers = #tpu.dot_dimension_numbers<[1], [0], [0], [1], [0, 0, 1, 1], [], []>} : vector<16x128xbf16>, vector<128x128xbf16>, vector<16x128xf32> -> vector<16x128xf32>
    %c0_9 = arith.constant 0 : index
    %c0_10 = arith.constant 0 : index
    %11 = vector.load %arg5[%c0_9, %c0_10] : memref<1x128xf32, #tpu.memory_space<vmem>>, vector<1x128xf32>
    %12 = vector.broadcast %11 : vector<1x128xf32> to vector<16x128xf32>
    %13 = arith.addf %10, %12 : vector<16x128xf32>
    %cst_11 = arith.constant 0.000000e+00 : f32
    %14 = vector.broadcast %cst_11 : f32 to vector<16x128xf32>
    %15 = arith.maximumf %13, %14 : vector<16x128xf32>
    %16 = arith.truncf %15 : vector<16x128xf32> to vector<16x128xbf16>
    %c0_12 = arith.constant 0 : index
    %c0_13 = arith.constant 0 : index
    %17 = vector.load %arg8[%c0_12, %c0_13] : memref<16x128xbf16, #tpu.memory_space<vmem>>, vector<16x128xbf16>
    tpu.vector_store %arg8[%c0_12, %c0_13], %16 {strides = array<i32>} : memref<16x128xbf16, #tpu.memory_space<vmem>>, vector<16x128xbf16>,
    %18 = arith.truncf %15 : vector<16x128xf32> to vector<16x128xbf16>
    %c0_14 = arith.constant 0 : index
    %c0_15 = arith.constant 0 : index
    %19 = vector.load %arg6[%c0_14, %c0_15] : memref<128x128xbf16, #tpu.memory_space<vmem>>, vector<128x128xbf16>
    %cst_16 = arith.constant dense<0.000000e+00> : vector<16x128xf32>
    %20 = tpu.matmul %18, %19, %cst_16 {dimension_numbers = #tpu.dot_dimension_numbers<[1], [0], [0], [1], [0, 0, 1, 1], [], []>} : vector<16x128xbf16>, vector<128x128xbf16>, vector<16x128xf32> -> vector<16x128xf32>
    %c0_17 = arith.constant 0 : index
    %c0_18 = arith.constant 0 : index
    %21 = vector.load %arg7[%c0_17, %c0_18] : memref<1x128xf32, #tpu.memory_space<vmem>>, vector<1x128xf32>
    %22 = vector.broadcast %21 : vector<1x128xf32> to vector<16x128xf32>
    %23 = arith.addf %20, %22 : vector<16x128xf32>
    %24 = arith.truncf %23 : vector<16x128xf32> to vector<16x128xbf16>
    %c0_19 = arith.constant 0 : index
    %c0_20 = arith.constant 0 : index
    %25 = vector.load %arg9[%c0_19, %c0_20] : memref<16x128xbf16, #tpu.memory_space<vmem>>, vector<16x128xbf16>
    tpu.vector_store %arg9[%c0_19, %c0_20], %24 {strides = array<i32>} : memref<16x128xbf16, #tpu.memory_space<vmem>>, vector<16x128xbf16>,
    return
  }
  func.func @transform_0(%arg0: i32) -> (i32, i32) {
    %c0_i32 = arith.constant 0 : i32
    %c0_i32_0 = arith.constant 0 : i32
    return %arg0, %c0_i32 : i32, i32
  }
  func.func @transform_1(%arg0: i32) -> (i32, i32) {
    %c0_i32 = arith.constant 0 : i32
    %c0_i32_0 = arith.constant 0 : i32
    %c0_i32_1 = arith.constant 0 : i32
    return %c0_i32, %c0_i32_0 : i32, i32
  }
  func.func @transform_2(%arg0: i32) -> (i32, i32) {
    %c0_i32 = arith.constant 0 : i32
    %c0_i32_0 = arith.constant 0 : i32
    %c0_i32_1 = arith.constant 0 : i32
    return %c0_i32, %c0_i32_0 : i32, i32
  }
  func.func @transform_3(%arg0: i32) -> (i32, i32) {
    %c0_i32 = arith.constant 0 : i32
    %c0_i32_0 = arith.constant 0 : i32
    %c0_i32_1 = arith.constant 0 : i32
    return %c0_i32, %c0_i32_0 : i32, i32
  }
  func.func @transform_4(%arg0: i32) -> (i32, i32) {
    %c0_i32 = arith.constant 0 : i32
    %c0_i32_0 = arith.constant 0 : i32
    %c0_i32_1 = arith.constant 0 : i32
    return %c0_i32, %c0_i32_0 : i32, i32
  }
  func.func @transform_5(%arg0: i32) -> (i32, i32) {
    %c0_i32 = arith.constant 0 : i32
    %c0_i32_0 = arith.constant 0 : i32
    %c0_i32_1 = arith.constant 0 : i32
    return %c0_i32, %c0_i32_0 : i32, i32
  }
  func.func @transform_6(%arg0: i32) -> (i32, i32) {
    %c0_i32 = arith.constant 0 : i32
    %c0_i32_0 = arith.constant 0 : i32
    %c0_i32_1 = arith.constant 0 : i32
    return %c0_i32, %c0_i32_0 : i32, i32
  }
  func.func @transform_7(%arg0: i32) -> (i32, i32) {
    %c0_i32 = arith.constant 0 : i32
    %c0_i32_0 = arith.constant 0 : i32
    return %arg0, %c0_i32 : i32, i32
  }
  func.func @transform_8(%arg0: i32) -> (i32, i32) {
    %c0_i32 = arith.constant 0 : i32
    %c0_i32_0 = arith.constant 0 : i32
    return %arg0, %c0_i32 : i32, i32
  }
}

module attributes {stable_mosaic.version = 11 : i64} {
  func.func @_box_head_kernel(%arg0: i32, %arg1: memref<16x128xbf16, #tpu.memory_space<vmem>>, %arg2: memref<128x128xbf16, #tpu.memory_space<vmem>>, %arg3: memref<1x128xf32, #tpu.memory_space<vmem>>, %arg4: memref<128x128xbf16, #tpu.memory_space<vmem>>, %arg5: memref<1x128xf32, #tpu.memory_space<vmem>>, %arg6: memref<128x128xbf16, #tpu.memory_space<vmem>>, %arg7: memref<1x128xf32, #tpu.memory_space<vmem>>, %arg8: memref<16x128xbf16, #tpu.memory_space<vmem>>, %arg9: memref<16x128xbf16, #tpu.memory_space<vmem>>) attributes {dimension_semantics = [#tpu.dimension_semantics<parallel>], iteration_bounds = array<i64: 1>, scalar_prefetch = 0 : i64, scratch_operands = 0 : i64, tpu.core_type = #tpu.core_type<tc>, window_params = [{transform_indices = @transform_0, window_bounds = array<i64: 16, 128>}, {pipeline_mode = #tpu.pipeline_mode<synchronous>, transform_indices = @transform_1, window_bounds = array<i64: 128, 128>}, {pipeline_mode = #tpu.pipeline_mode<synchronous>, transform_indices = @transform_2, window_bounds = array<i64: 1, 128>}, {pipeline_mode = #tpu.pipeline_mode<synchronous>, transform_indices = @transform_3, window_bounds = array<i64: 128, 128>}, {pipeline_mode = #tpu.pipeline_mode<synchronous>, transform_indices = @transform_4, window_bounds = array<i64: 1, 128>}, {pipeline_mode = #tpu.pipeline_mode<synchronous>, transform_indices = @transform_5, window_bounds = array<i64: 128, 128>}, {pipeline_mode = #tpu.pipeline_mode<synchronous>, transform_indices = @transform_6, window_bounds = array<i64: 1, 128>}, {transform_indices = @transform_7, window_bounds = array<i64: 16, 128>}, {transform_indices = @transform_8, window_bounds = array<i64: 16, 128>}]} {
    %c0 = arith.constant 0 : index
    %c0_0 = arith.constant 0 : index
    %0 = vector.load %arg1[%c0, %c0_0] : memref<16x128xbf16, #tpu.memory_space<vmem>>, vector<16x128xbf16>
    %c0_1 = arith.constant 0 : index
    %c0_2 = arith.constant 0 : index
    %1 = vector.load %arg2[%c0_1, %c0_2] : memref<128x128xbf16, #tpu.memory_space<vmem>>, vector<128x128xbf16>
    %cst = arith.constant dense<0.000000e+00> : vector<16x128xf32>
    %2 = tpu.matmul %0, %1, %cst {dimension_numbers = #tpu.dot_dimension_numbers<[1], [0], [0], [1], [0, 0, 1, 1], [], []>} : vector<16x128xbf16>, vector<128x128xbf16>, vector<16x128xf32> -> vector<16x128xf32>
    %c0_3 = arith.constant 0 : index
    %c0_4 = arith.constant 0 : index
    %3 = vector.load %arg3[%c0_3, %c0_4] : memref<1x128xf32, #tpu.memory_space<vmem>>, vector<1x128xf32>
    %4 = vector.broadcast %3 : vector<1x128xf32> to vector<16x128xf32>
    %5 = arith.addf %2, %4 : vector<16x128xf32>
    %cst_5 = arith.constant 0.000000e+00 : f32
    %6 = vector.broadcast %cst_5 : f32 to vector<16x128xf32>
    %7 = arith.maximumf %5, %6 : vector<16x128xf32>
    %8 = arith.truncf %7 : vector<16x128xf32> to vector<16x128xbf16>
    %c0_6 = arith.constant 0 : index
    %c0_7 = arith.constant 0 : index
    %9 = vector.load %arg4[%c0_6, %c0_7] : memref<128x128xbf16, #tpu.memory_space<vmem>>, vector<128x128xbf16>
    %cst_8 = arith.constant dense<0.000000e+00> : vector<16x128xf32>
    %10 = tpu.matmul %8, %9, %cst_8 {dimension_numbers = #tpu.dot_dimension_numbers<[1], [0], [0], [1], [0, 0, 1, 1], [], []>} : vector<16x128xbf16>, vector<128x128xbf16>, vector<16x128xf32> -> vector<16x128xf32>
    %c0_9 = arith.constant 0 : index
    %c0_10 = arith.constant 0 : index
    %11 = vector.load %arg5[%c0_9, %c0_10] : memref<1x128xf32, #tpu.memory_space<vmem>>, vector<1x128xf32>
    %12 = vector.broadcast %11 : vector<1x128xf32> to vector<16x128xf32>
    %13 = arith.addf %10, %12 : vector<16x128xf32>
    %cst_11 = arith.constant 0.000000e+00 : f32
    %14 = vector.broadcast %cst_11 : f32 to vector<16x128xf32>
    %15 = arith.maximumf %13, %14 : vector<16x128xf32>
    %16 = arith.truncf %15 : vector<16x128xf32> to vector<16x128xbf16>
    %c0_12 = arith.constant 0 : index
    %c0_13 = arith.constant 0 : index
    %17 = vector.load %arg8[%c0_12, %c0_13] : memref<16x128xbf16, #tpu.memory_space<vmem>>, vector<16x128xbf16>
    tpu.vector_store %arg8[%c0_12, %c0_13], %16 {strides = array<i32>} : memref<16x128xbf16, #tpu.memory_space<vmem>>, vector<16x128xbf16>,
    %18 = arith.truncf %15 : vector<16x128xf32> to vector<16x128xbf16>
    %c0_14 = arith.constant 0 : index
    %c0_15 = arith.constant 0 : index
    %19 = vector.load %arg6[%c0_14, %c0_15] : memref<128x128xbf16, #tpu.memory_space<vmem>>, vector<128x128xbf16>
    %cst_16 = arith.constant dense<0.000000e+00> : vector<16x128xf32>
    %20 = tpu.matmul %18, %19, %cst_16 {dimension_numbers = #tpu.dot_dimension_numbers<[1], [0], [0], [1], [0, 0, 1, 1], [], []>} : vector<16x128xbf16>, vector<128x128xbf16>, vector<16x128xf32> -> vector<16x128xf32>
    %c0_17 = arith.constant 0 : index
    %c0_18 = arith.constant 0 : index
    %21 = vector.load %arg7[%c0_17, %c0_18] : memref<1x128xf32, #tpu.memory_space<vmem>>, vector<1x128xf32>
    %22 = vector.broadcast %21 : vector<1x128xf32> to vector<16x128xf32>
    %23 = arith.addf %20, %22 : vector<16x128xf32>
    %24 = arith.truncf %23 : vector<16x128xf32> to vector<16x128xbf16>
    %c0_19 = arith.constant 0 : index
    %c0_20 = arith.constant 0 : index
    %25 = vector.load %arg9[%c0_19, %c0_20] : memref<16x128xbf16, #tpu.memory_space<vmem>>, vector<16x128xbf16>
    tpu.vector_store %arg9[%c0_19, %c0_20], %24 {strides = array<i32>} : memref<16x128xbf16, #tpu.memory_space<vmem>>, vector<16x128xbf16>,
    return
  }
  func.func @transform_0(%arg0: i32) -> (i32, i32) {
    %c0_i32 = arith.constant 0 : i32
    %c0_i32_0 = arith.constant 0 : i32
    return %arg0, %c0_i32 : i32, i32
  }
  func.func @transform_1(%arg0: i32) -> (i32, i32) {
    %c0_i32 = arith.constant 0 : i32
    %c0_i32_0 = arith.constant 0 : i32
    %c0_i32_1 = arith.constant 0 : i32
    return %c0_i32, %c0_i32_0 : i32, i32
  }
  func.func @transform_2(%arg0: i32) -> (i32, i32) {
    %c0_i32 = arith.constant 0 : i32
    %c0_i32_0 = arith.constant 0 : i32
    %c0_i32_1 = arith.constant 0 : i32
    return %c0_i32, %c0_i32_0 : i32, i32
  }
  func.func @transform_3(%arg0: i32) -> (i32, i32) {
    %c0_i32 = arith.constant 0 : i32
    %c0_i32_0 = arith.constant 0 : i32
    %c0_i32_1 = arith.constant 0 : i32
    return %c0_i32, %c0_i32_0 : i32, i32
  }
  func.func @transform_4(%arg0: i32) -> (i32, i32) {
    %c0_i32 = arith.constant 0 : i32
    %c0_i32_0 = arith.constant 0 : i32
    %c0_i32_1 = arith.constant 0 : i32
    return %c0_i32, %c0_i32_0 : i32, i32
  }
  func.func @transform_5(%arg0: i32) -> (i32, i32) {
    %c0_i32 = arith.constant 0 : i32
    %c0_i32_0 = arith.constant 0 : i32
    %c0_i32_1 = arith.constant 0 : i32
    return %c0_i32, %c0_i32_0 : i32, i32
  }
  func.func @transform_6(%arg0: i32) -> (i32, i32) {
    %c0_i32 = arith.constant 0 : i32
    %c0_i32_0 = arith.constant 0 : i32
    %c0_i32_1 = arith.constant 0 : i32
    return %c0_i32, %c0_i32_0 : i32, i32
  }
  func.func @transform_7(%arg0: i32) -> (i32, i32) {
    %c0_i32 = arith.constant 0 : i32
    %c0_i32_0 = arith.constant 0 : i32
    return %arg0, %c0_i32 : i32, i32
  }
  func.func @transform_8(%arg0: i32) -> (i32, i32) {
    %c0_i32 = arith.constant 0 : i32
    %c0_i32_0 = arith.constant 0 : i32
    return %arg0, %c0_i32 : i32, i32
  }
}

</mosaic_0001>

<bundles_post_ra>
// kernel: tpu_custom_call.1
= control target key start
LH: loop header
LB: loop body
LE: loop exit
PB: predicated region body
PF: predicated region fallthrough
CT: control target
= control target key end

     0   :  { %14 = vsyncpa [#allocation3], 0  ;;  %s918_s0 = inlined_call_operand.hbm [shape: bf16[16,128], index: 0, kind: input, shape index: {}]   ;;  %s919_s1 = inlined_call_operand.hbm [shape: bf16[128,128], index: 1, kind: input, shape index: {}]   ;;  %s920_s2 = inlined_call_operand.vmem [shape: f32[1,128], index: 2, kind: input, shape index: {}]   ;;  %s921_s3 = inlined_call_operand.hbm [shape: bf16[128,128], index: 3, kind: input, shape index: {}]   ;;  %s922_s4 = inlined_call_operand.vmem [shape: f32[1,128], index: 4, kind: input, shape index: {}]   ;;  %s923_s5 = inlined_call_operand.hbm [shape: bf16[128,128], index: 5, kind: input, shape index: {}]   ;;  %s924_s6 = inlined_call_operand.vmem [shape: f32[1,128], index: 6, kind: input, shape index: {}]   ;;  %s925_s7 = inlined_call_operand.hbm [shape: bf16[16,128], index: 7, kind: output, shape index: {0}]   ;;  %s926_s8 = inlined_call_operand.hbm [shape: bf16[16,128], index: 8, kind: output, shape index: {1}]  }
   0x1   :  { %15 = vsyncpa [#allocation6], 0 }
   0x2   :  { %16 = vsyncpa [#allocation9], 0 }
   0x3   :  { %17 = vsyncpa [#allocation4], 0 }
   0x4   :  { %18 = vsyncpa [#allocation12], 0  ;;  %s788_s27 = smov [#allocation5]   ;;  %s789_s29 = smov [#allocation2]  }
   0x5   :  { %s36_s28 = sshll.u32 %s788_s27, 4  ;;  %s24_s30 = sshll.u32 %s789_s29, 4  ;;  %s37_s28 = int_to_ptr.vmem [resolvable:$true] %s36_s28  ;;  %s25_s30 = int_to_ptr.vmem [resolvable:$true] %s24_s30 }
   0x6   :  { %s666_s9 = scalar_lea.vmem %s37_s28, 1024  ;;  %p671_p1 = scmp.lt.s32.totalorder %s37_s28, %s37_s28 }
   0x7   :  { %p667_p0 = scmp.ne.s32.totalorder %s37_s28, %s666_s9  ;;  %p672_p2 = scmp.lt.s32.totalorder %s666_s9, %s666_s9 }
   0x9   :  { %p673_p3 = por %p672_p2, %p671_p1 }
   0xb   :  { %p674_p4 = pnand %p673_p3, %p667_p0 }
   0xd   :  { %677 = shalt.err (!%p674_p4)
}
   0xe   :  { %s790_s10 = smov 64   ;;  %s791_s11 = smov 4  }
   0xf   :  { %42 = dma.hbm_to_vmem [thread:$0]  %s919_s1, 1024, %s37_s28, [#allocation6], %s790_s10, %s790_s10, %s791_s11  }
  0x10   :  { %s686_s14 = scalar_lea.vmem %s25_s30, 128  ;;  %p691_p6 = scmp.lt.s32.totalorder %s25_s30, %s25_s30 }
  0x11   :  { %p687_p5 = scmp.ne.s32.totalorder %s25_s30, %s686_s14  ;;  %p692_p7 = scmp.lt.s32.totalorder %s686_s14, %s686_s14 }
  0x13   :  { %p693_p8 = por %p692_p7, %p691_p6 }
  0x15   :  { %p694_p9 = pnand %p693_p8, %p687_p5 }
  0x17   :  { %697 = shalt.err (!%p694_p9)
}
  0x18   :  { %30 = dma.hbm_to_vmem [thread:$0]  %s918_s0, 128, %s25_s30, [#allocation3], %s790_s10, %s790_s10, %s791_s11  }
  0x19   :  { %s792_s17 = smov [#allocation7]   ;;  %s793_s19 = smov [#allocation8]  }
  0x1a   :  { %s50_s18 = sshll.u32 %s792_s17, 4  ;;  %s64_s20 = sshll.u32 %s793_s19, 4  ;;  %s51_s18 = int_to_ptr.vmem [resolvable:$true] %s50_s18  ;;  %s65_s20 = int_to_ptr.vmem [resolvable:$true] %s64_s20 }
  0x1b   :  { %s706_s1 = scalar_lea.vmem %s51_s18, 1024  ;;  %p711_p11 = scmp.lt.s32.totalorder %s51_s18, %s51_s18 }
  0x1c   :  { %p707_p10 = scmp.ne.s32.totalorder %s51_s18, %s706_s1  ;;  %p712_p12 = scmp.lt.s32.totalorder %s706_s1, %s706_s1 }
  0x1e   :  { %p713_p13 = por %p712_p12, %p711_p11 }
  0x20   :  { %p714_p0 = pnand %p713_p13, %p707_p10 }
  0x22   :  { %717 = shalt.err (!%p714_p0)
}
  0x23   :  { %56 = dma.hbm_to_vmem [thread:$0]  %s921_s3, 1024, %s51_s18, [#allocation6], %s790_s10, %s790_s10, %s791_s11  }
  0x24   :  { %s726_s0 = scalar_lea.vmem %s65_s20, 1024  ;;  %p731_p2 = scmp.lt.s32.totalorder %s65_s20, %s65_s20 }
  0x25   :  { %p727_p1 = scmp.ne.s32.totalorder %s65_s20, %s726_s0  ;;  %p732_p3 = scmp.lt.s32.totalorder %s726_s0, %s726_s0 }
  0x27   :  { %p733_p4 = por %p732_p3, %p731_p2 }
  0x29   :  { %p734_p5 = pnand %p733_p4, %p727_p1 }
  0x2b   :  { %737 = shalt.err (!%p734_p5)
}
  0x2c   :  { %70 = dma.hbm_to_vmem [thread:$0]  %s923_s5, 1024, %s65_s20, [#allocation9], %s790_s10, %s790_s10, %s791_s11  }
  0x2d   :  { %778 = dma.done.wait [#allocation3], 128  }
  0x2e   :  { %779 = vsyncadd [#allocation3], 4294967168 }
  0x2f   :  { %780 = dma.done.wait [#allocation6], 2048  }
  0x30   :  { %781 = vsyncadd [#allocation6], 4294965248 }
  0x31   :  { %782 = dma.done.wait [#allocation9], 1024  }
  0x32   :  { %783 = vsyncadd [#allocation9], 4294966272  ;;  %v794_v0 = vmov 0.0   ;;  %vm795_vm0 = vmmov 0   ;;  %v633_v1 = vld [vmem:[#allocation5 + $0x38] sm:$0xff]   ;;  %v634_v2 = vld [vmem:[#allocation5 + $0x30] sm:$0xff]  }
  0x33   :  { %563 = vmatprep.subr.bf16.mxu0 %v794_v0  ;;  %579 = vmatprep.mubr.msk.bf16.mxu0 %vm795_vm0, %v794_v0  ;;  %v635_v3 = vld [vmem:[#allocation5 + $0x28] sm:$0xff]   ;;  %v642_v4 = vld [vmem:[#allocation7 + $0x38] sm:$0xff]   ;;  %v636_v5 = vld [vmem:[#allocation5 + $0x20] sm:$0xff]   ;;  %s796_s26 = smov [#allocation10]  }
  0x34   :  { %583 = vmatprep.subr.bf16.mxu1 %v794_v0  ;;  %599 = vmatprep.mubr.msk.bf16.mxu1 %vm795_vm0, %v794_v0  ;;  %v643_v6 = vld [vmem:[#allocation7 + $0x30] sm:$0xff]   ;;  %v637_v7 = vld [vmem:[#allocation5 + $0x18] sm:$0xff]   ;;  %v644_v8 = vld [vmem:[#allocation7 + $0x28] sm:$0xff]   ;;  %s460_s27 = sshll.u32 %s796_s26, 4  ;;  %s461_s27 = int_to_ptr.vmem [resolvable:$true] %s460_s27 }
  0x35   :  { %564 = vmatpush3.bf16.msra.mxu0 %v633_v1  ;;  %584 = vmatpush3.bf16.msra.mxu1 %v642_v4  ;;  %v638_v9 = vld [vmem:[#allocation5 + $0x10] sm:$0xff]   ;;  %v645_v10 = vld [vmem:[#allocation7 + $0x20] sm:$0xff]   ;;  %v639_v11 = vld [vmem:[#allocation5 + $0x8] sm:$0xff]   ;;  %s738_s28 = scalar_lea.vmem %s461_s27, 128  ;;  %p743_p7 = scmp.lt.s32.totalorder %s461_s27, %s461_s27 }
  0x36   :  { %565 = vmatprep.subr.bf16.mxu0 %v794_v0  ;;  %585 = vmatprep.subr.bf16.mxu1 %v794_v0  ;;  %v646_v12 = vld [vmem:[#allocation7 + $0x18] sm:$0xff]   ;;  %v640_v13 = vld [vmem:[#allocation5] sm:$0xff]   ;;  %v647_v15 = vld [vmem:[#allocation7 + $0x10] sm:$0xff]   ;;  %p739_p6 = scmp.ne.s32.totalorder %s461_s27, %s738_s28  ;;  %p744_p8 = scmp.lt.s32.totalorder %s738_s28, %s738_s28 }
  0x37   :  { %v641_v14 = vld [vmem:[#allocation2] sm:$0xff]   ;;  %v648_v16 = vld [vmem:[#allocation7 + $0x8] sm:$0xff]   ;;  %v649_v17 = vld [vmem:[#allocation7] sm:$0xff]  }
  0x38   :  { %v650_v18 = vld [vmem:[#allocation8 + $0x38] sm:$0xff]   ;;  %v651_v19 = vld [vmem:[#allocation8 + $0x30] sm:$0xff]   ;;  %v652_v20 = vld [vmem:[#allocation8 + $0x28] sm:$0xff]   ;;  %p745_p9 = por %p744_p8, %p743_p7 }
  0x39   :  { %566 = vmatpush3.bf16.msra.mxu0 %v634_v2  ;;  %586 = vmatpush3.bf16.msra.mxu1 %v643_v6  ;;  %v653_v21 = vld [vmem:[#allocation8 + $0x20] sm:$0xff]   ;;  %v654_v22 = vld [vmem:[#allocation8 + $0x18] sm:$0xff]   ;;  %v655_v33 = vld [vmem:[#allocation8 + $0x10] sm:$0xff]  }
  0x3a   :  { %567 = vmatprep.subr.bf16.mxu0 %v794_v0  ;;  %587 = vmatprep.subr.bf16.mxu1 %v794_v0  ;;  %v490_v23 = vld [vmem:[%s920_s2] ss:$0 sm:$0xff]  ;;  %v656_v34 = vld [vmem:[#allocation8 + $0x8] sm:$0xff]   ;;  %v657_v35 = vld [vmem:[#allocation8] sm:$0xff]   ;;  %p746_p10 = pnand %p745_p9, %p739_p6 }
  0x3b   :  { %v500_v36 = vld [vmem:[%s922_s4] ss:$0 sm:$0xff] }
  0x3d   :  { %568 = vmatpush3.bf16.msra.mxu0 %v635_v3  ;;  %588 = vmatpush3.bf16.msra.mxu1 %v644_v8 }
  0x3e   :  { %569 = vmatprep.subr.bf16.mxu0 %v794_v0  ;;  %589 = vmatprep.subr.bf16.mxu1 %v794_v0 }
  0x41   :  { %570 = vmatpush3.bf16.msra.mxu0 %v636_v5  ;;  %590 = vmatpush3.bf16.msra.mxu1 %v645_v10 }
  0x42   :  { %571 = vmatprep.subr.bf16.mxu0 %v794_v0  ;;  %591 = vmatprep.subr.bf16.mxu1 %v794_v0 }
  0x45   :  { %572 = vmatpush3.bf16.msra.mxu0 %v637_v7  ;;  %592 = vmatpush3.bf16.msra.mxu1 %v646_v12 }
  0x46   :  { %573 = vmatprep.subr.bf16.mxu0 %v794_v0  ;;  %593 = vmatprep.subr.bf16.mxu1 %v794_v0 }
  0x49   :  { %574 = vmatpush3.bf16.msra.mxu0 %v638_v9  ;;  %594 = vmatpush3.bf16.msra.mxu1 %v647_v15 }
  0x4a   :  { %575 = vmatprep.subr.bf16.mxu0 %v794_v0  ;;  %595 = vmatprep.subr.bf16.mxu1 %v794_v0 }
  0x4d   :  { %576 = vmatpush3.bf16.msra.mxu0 %v639_v11  ;;  %596 = vmatpush3.bf16.msra.mxu1 %v648_v16 }
  0x4e   :  { %577 = vmatprep.subr.bf16.mxu0 %v794_v0  ;;  %597 = vmatprep.subr.bf16.mxu1 %v794_v0 }
  0x51   :  { %578 = vmatpush3.bf16.msra.mxu0 %v640_v13  ;;  %598 = vmatpush3.bf16.msra.mxu1 %v649_v17 }
  0x52   :  { %603 = vmatprep.subr.bf16.mxu0 %v794_v0 }
  0x54   :  { %580 = vmatmul.mubr.bf16.vlgmr.msra.gmra.mxu0 %v641_v14 }
  0x55   :  { %619 = vmatprep.mubr.msk.bf16.mxu0 %vm795_vm0, %v794_v0  ;;  %604 = vmatpush3.bf16.msra.mxu0 %v650_v18 }
  0x56   :  { %605 = vmatprep.subr.bf16.mxu0 %v794_v0 }
  0x59   :  { %606 = vmatpush3.bf16.msra.mxu0 %v651_v19 }
  0x5a   :  { %607 = vmatprep.subr.bf16.mxu0 %v794_v0 }
  0x5d   :  { %608 = vmatpush3.bf16.msra.mxu0 %v652_v20 }
  0x5e   :  { %609 = vmatprep.subr.bf16.mxu0 %v794_v0 }
  0x61   :  { %610 = vmatpush3.bf16.msra.mxu0 %v653_v21 }
  0x62   :  { %611 = vmatprep.subr.bf16.mxu0 %v794_v0 }
  0x65   :  { %612 = vmatpush3.bf16.msra.mxu0 %v654_v22 }
  0x66   :  { %613 = vmatprep.subr.bf16.mxu0 %v794_v0 }
  0x69   :  { %614 = vmatpush3.bf16.msra.mxu0 %v655_v33 }
  0x6a   :  { %615 = vmatprep.subr.bf16.mxu0 %v794_v0 }
  0x6d   :  { %616 = vmatpush3.bf16.msra.mxu0 %v656_v34 }
  0x6e   :  { %617 = vmatprep.subr.bf16.mxu0 %v794_v0 }
  0x71   :  { %618 = vmatpush3.bf16.msra.mxu0 %v657_v35 }
 0x114   :  { %v199_v24 = vpop.f32.mrf.mxu0 }
 0x115   :  { %v200_v26 = vadd.f32 %v490_v23, %v199_v24 }
 0x116   :  { %v581_v25 = vpop.f32.mrf.mxu0 }
 0x117   :  { %v206_v30 = vmax.f32 %v200_v26, 0.0 }
 0x118   :  { %v202_v27 = vpop.f32.mrf.mxu0 }
 0x119   :  { %v203_v28 = vadd.f32 %v490_v23, %v202_v27 }
 0x11a   :  { %v582_v29 = vpop.f32.mrf.mxu0 }
 0x11b   :  { %v207_v31 = vmax.f32 %v203_v28, 0.0 }
 0x11d   :  { %v208_v32 = vpack.c.bf16 %v207_v31, %v206_v30 }
 0x11f   :  { %600 = vmatmul.mubr.bf16.vlgmr.msra.gmra.mxu1 %v208_v32 }
 0x1df   :  { %v314_v37 = vpop.f32.mrf.mxu1 }
 0x1e0   :  { %v315_v39 = vadd.f32 %v500_v36, %v314_v37 }
 0x1e1   :  { %v601_v38 = vpop.f32.mrf.mxu1 }
 0x1e2   :  { %v321_v43 = vmax.f32 %v315_v39, 0.0 }
 0x1e3   :  { %v317_v40 = vpop.f32.mrf.mxu1 }
 0x1e4   :  { %v318_v41 = vadd.f32 %v500_v36, %v317_v40 }
 0x1e5   :  { %v602_v42 = vpop.f32.mrf.mxu1 }
 0x1e6   :  { %v322_v44 = vmax.f32 %v318_v41, 0.0 }
 0x1e8   :  { %v323_v45 = vpack.c.bf16 %v322_v44, %v321_v43 }
 0x1ea   :  { %530 = vst [vmem:[#allocation10] sm:$0xff] %v323_v45   ;;  %620 = vmatmul.mubr.bf16.vlgmr.msra.gmra.mxu0 %v323_v45 }
 0x1eb   :  { %749 = shalt.err (!%p746_p10)
}
 0x1ec   :  { %466 = dma.vmem_to_hbm [thread:$0]  %s461_s27, 128, %s925_s7, [#allocation4], %s790_s10, %s790_s10, %s791_s11  }
 0x1ed   :  { %v511_v47 = vld [vmem:[%s924_s6] ss:$0 sm:$0xff]  ;;  %s797_s12 = smov [#allocation11]  }
 0x1ee   :  { %s472_s13 = sshll.u32 %s797_s12, 4  ;;  %s473_s13 = int_to_ptr.vmem [resolvable:$true] %s472_s13 }
 0x1ef   :  { %s758_s14 = scalar_lea.vmem %s473_s13, 128  ;;  %p763_p12 = scmp.lt.s32.totalorder %s473_s13, %s473_s13 }
 0x1f0   :  { %p759_p11 = scmp.ne.s32.totalorder %s473_s13, %s758_s14  ;;  %p764_p13 = scmp.lt.s32.totalorder %s758_s14, %s758_s14 }
 0x1f2   :  { %p765_p0 = por %p764_p13, %p763_p12 }
 0x1f4   :  { %p766_p1 = pnand %p765_p0, %p759_p11 }
 0x2aa   :  { %v438_v46 = vpop.f32.mrf.mxu0 }
 0x2ab   :  { %v439_v50 = vadd.f32 %v511_v47, %v438_v46 }
 0x2ac   :  { %v621_v48 = vpop.f32.mrf.mxu0 }
 0x2ae   :  { %v441_v49 = vpop.f32.mrf.mxu0 }
 0x2af   :  { %v442_v51 = vadd.f32 %v511_v47, %v441_v49 }
 0x2b0   :  { %v622_v52 = vpop.f32.mrf.mxu0 }
 0x2b1   :  { %v534_v53 = vpack.c.bf16 %v442_v51, %v439_v50 }
 0x2b3   :  { %535 = vst [vmem:[#allocation11] sm:$0xff] %v534_v53  }
 0x2b4   :  { %769 = shalt.err (!%p766_p1)
}
 0x2b5   :  { %478 = dma.vmem_to_hbm [thread:$0]  %s473_s13, 128, %s926_s8, [#allocation12], %s790_s10, %s790_s10, %s791_s11  }
 0x2b6   :  { %784 = dma.done.wait [#allocation4], 128  }
 0x2b7   :  { %785 = vsyncadd [#allocation4], 4294967168 }
 0x2b8   :  { %786 = dma.done.wait [#allocation12], 128  }
 0x2b9   :  { %787 = vsyncadd [#allocation12], 4294967168 }
 0x2ba   :  { %485 = vsyncpa [#allocation3], 1 }
 0x2bb   :  { %486 = vsyncpa [#allocation6], 1 }
 0x2bc   :  { %487 = vsyncpa [#allocation9], 1 }
 0x2bd   :  { %488 = vsyncpa [#allocation4], 1 }
 0x2be   :  { %489 = vsyncpa [#allocation12], 1 }

// kernel: tpu_custom_call.1
= control target key start
LH: loop header
LB: loop body
LE: loop exit
PB: predicated region body
PF: predicated region fallthrough
CT: control target
= control target key end

     0   :  { %14 = vsyncpa [#allocation3], 0  ;;  %s918_s0 = inlined_call_operand.hbm [shape: bf16[16,128], index: 0, kind: input, shape index: {}]   ;;  %s919_s1 = inlined_call_operand.hbm [shape: bf16[128,128], index: 1, kind: input, shape index: {}]   ;;  %s920_s2 = inlined_call_operand.vmem [shape: f32[1,128], index: 2, kind: input, shape index: {}]   ;;  %s921_s3 = inlined_call_operand.hbm [shape: bf16[128,128], index: 3, kind: input, shape index: {}]   ;;  %s922_s4 = inlined_call_operand.vmem [shape: f32[1,128], index: 4, kind: input, shape index: {}]   ;;  %s923_s5 = inlined_call_operand.hbm [shape: bf16[128,128], index: 5, kind: input, shape index: {}]   ;;  %s924_s6 = inlined_call_operand.vmem [shape: f32[1,128], index: 6, kind: input, shape index: {}]   ;;  %s925_s7 = inlined_call_operand.hbm [shape: bf16[16,128], index: 7, kind: output, shape index: {0}]   ;;  %s926_s8 = inlined_call_operand.hbm [shape: bf16[16,128], index: 8, kind: output, shape index: {1}]  }
   0x1   :  { %15 = vsyncpa [#allocation6], 0 }
   0x2   :  { %16 = vsyncpa [#allocation9], 0 }
   0x3   :  { %17 = vsyncpa [#allocation4], 0 }
   0x4   :  { %18 = vsyncpa [#allocation12], 0  ;;  %s788_s27 = smov [#allocation5]   ;;  %s789_s29 = smov [#allocation2]  }
   0x5   :  { %s36_s28 = sshll.u32 %s788_s27, 4  ;;  %s24_s30 = sshll.u32 %s789_s29, 4  ;;  %s37_s28 = int_to_ptr.vmem [resolvable:$true] %s36_s28  ;;  %s25_s30 = int_to_ptr.vmem [resolvable:$true] %s24_s30 }
   0x6   :  { %s666_s9 = scalar_lea.vmem %s37_s28, 1024  ;;  %p671_p1 = scmp.lt.s32.totalorder %s37_s28, %s37_s28 }
   0x7   :  { %p667_p0 = scmp.ne.s32.totalorder %s37_s28, %s666_s9  ;;  %p672_p2 = scmp.lt.s32.totalorder %s666_s9, %s666_s9 }
   0x9   :  { %p673_p3 = por %p672_p2, %p671_p1 }
   0xb   :  { %p674_p4 = pnand %p673_p3, %p667_p0 }
   0xd   :  { %677 = shalt.err (!%p674_p4)
}
   0xe   :  { %s790_s10 = smov 64   ;;  %s791_s11 = smov 4  }
   0xf   :  { %42 = dma.hbm_to_vmem [thread:$0]  %s919_s1, 1024, %s37_s28, [#allocation6], %s790_s10, %s790_s10, %s791_s11  }
  0x10   :  { %s686_s14 = scalar_lea.vmem %s25_s30, 128  ;;  %p691_p6 = scmp.lt.s32.totalorder %s25_s30, %s25_s30 }
  0x11   :  { %p687_p5 = scmp.ne.s32.totalorder %s25_s30, %s686_s14  ;;  %p692_p7 = scmp.lt.s32.totalorder %s686_s14, %s686_s14 }
  0x13   :  { %p693_p8 = por %p692_p7, %p691_p6 }
  0x15   :  { %p694_p9 = pnand %p693_p8, %p687_p5 }
  0x17   :  { %697 = shalt.err (!%p694_p9)
}
  0x18   :  { %30 = dma.hbm_to_vmem [thread:$0]  %s918_s0, 128, %s25_s30, [#allocation3], %s790_s10, %s790_s10, %s791_s11  }
  0x19   :  { %s792_s17 = smov [#allocation7]   ;;  %s793_s19 = smov [#allocation8]  }
  0x1a   :  { %s50_s18 = sshll.u32 %s792_s17, 4  ;;  %s64_s20 = sshll.u32 %s793_s19, 4  ;;  %s51_s18 = int_to_ptr.vmem [resolvable:$true] %s50_s18  ;;  %s65_s20 = int_to_ptr.vmem [resolvable:$true] %s64_s20 }
  0x1b   :  { %s706_s1 = scalar_lea.vmem %s51_s18, 1024  ;;  %p711_p11 = scmp.lt.s32.totalorder %s51_s18, %s51_s18 }
  0x1c   :  { %p707_p10 = scmp.ne.s32.totalorder %s51_s18, %s706_s1  ;;  %p712_p12 = scmp.lt.s32.totalorder %s706_s1, %s706_s1 }
  0x1e   :  { %p713_p13 = por %p712_p12, %p711_p11 }
  0x20   :  { %p714_p0 = pnand %p713_p13, %p707_p10 }
  0x22   :  { %717 = shalt.err (!%p714_p0)
}
  0x23   :  { %56 = dma.hbm_to_vmem [thread:$0]  %s921_s3, 1024, %s51_s18, [#allocation6], %s790_s10, %s790_s10, %s791_s11  }
  0x24   :  { %s726_s0 = scalar_lea.vmem %s65_s20, 1024  ;;  %p731_p2 = scmp.lt.s32.totalorder %s65_s20, %s65_s20 }
  0x25   :  { %p727_p1 = scmp.ne.s32.totalorder %s65_s20, %s726_s0  ;;  %p732_p3 = scmp.lt.s32.totalorder %s726_s0, %s726_s0 }
  0x27   :  { %p733_p4 = por %p732_p3, %p731_p2 }
  0x29   :  { %p734_p5 = pnand %p733_p4, %p727_p1 }
  0x2b   :  { %737 = shalt.err (!%p734_p5)
}
  0x2c   :  { %70 = dma.hbm_to_vmem [thread:$0]  %s923_s5, 1024, %s65_s20, [#allocation9], %s790_s10, %s790_s10, %s791_s11  }
  0x2d   :  { %778 = dma.done.wait [#allocation3], 128  }
  0x2e   :  { %779 = vsyncadd [#allocation3], 4294967168 }
  0x2f   :  { %780 = dma.done.wait [#allocation6], 2048  }
  0x30   :  { %781 = vsyncadd [#allocation6], 4294965248 }
  0x31   :  { %782 = dma.done.wait [#allocation9], 1024  }
  0x32   :  { %783 = vsyncadd [#allocation9], 4294966272  ;;  %v794_v0 = vmov 0.0   ;;  %vm795_vm0 = vmmov 0   ;;  %v633_v1 = vld [vmem:[#allocation5 + $0x38] sm:$0xff]   ;;  %v634_v2 = vld [vmem:[#allocation5 + $0x30] sm:$0xff]  }
  0x33   :  { %563 = vmatprep.subr.bf16.mxu0 %v794_v0  ;;  %579 = vmatprep.mubr.msk.bf16.mxu0 %vm795_vm0, %v794_v0  ;;  %v635_v3 = vld [vmem:[#allocation5 + $0x28] sm:$0xff]   ;;  %v642_v4 = vld [vmem:[#allocation7 + $0x38] sm:$0xff]   ;;  %v636_v5 = vld [vmem:[#allocation5 + $0x20] sm:$0xff]   ;;  %s796_s26 = smov [#allocation10]  }
  0x34   :  { %583 = vmatprep.subr.bf16.mxu1 %v794_v0  ;;  %599 = vmatprep.mubr.msk.bf16.mxu1 %vm795_vm0, %v794_v0  ;;  %v643_v6 = vld [vmem:[#allocation7 + $0x30] sm:$0xff]   ;;  %v637_v7 = vld [vmem:[#allocation5 + $0x18] sm:$0xff]   ;;  %v644_v8 = vld [vmem:[#allocation7 + $0x28] sm:$0xff]   ;;  %s460_s27 = sshll.u32 %s796_s26, 4  ;;  %s461_s27 = int_to_ptr.vmem [resolvable:$true] %s460_s27 }
  0x35   :  { %564 = vmatpush3.bf16.msra.mxu0 %v633_v1  ;;  %584 = vmatpush3.bf16.msra.mxu1 %v642_v4  ;;  %v638_v9 = vld [vmem:[#allocation5 + $0x10] sm:$0xff]   ;;  %v645_v10 = vld [vmem:[#allocation7 + $0x20] sm:$0xff]   ;;  %v639_v11 = vld [vmem:[#allocation5 + $0x8] sm:$0xff]   ;;  %s738_s28 = scalar_lea.vmem %s461_s27, 128  ;;  %p743_p7 = scmp.lt.s32.totalorder %s461_s27, %s461_s27 }
  0x36   :  { %565 = vmatprep.subr.bf16.mxu0 %v794_v0  ;;  %585 = vmatprep.subr.bf16.mxu1 %v794_v0  ;;  %v646_v12 = vld [vmem:[#allocation7 + $0x18] sm:$0xff]   ;;  %v640_v13 = vld [vmem:[#allocation5] sm:$0xff]   ;;  %v647_v15 = vld [vmem:[#allocation7 + $0x10] sm:$0xff]   ;;  %p739_p6 = scmp.ne.s32.totalorder %s461_s27, %s738_s28  ;;  %p744_p8 = scmp.lt.s32.totalorder %s738_s28, %s738_s28 }
  0x37   :  { %v641_v14 = vld [vmem:[#allocation2] sm:$0xff]   ;;  %v648_v16 = vld [vmem:[#allocation7 + $0x8] sm:$0xff]   ;;  %v649_v17 = vld [vmem:[#allocation7] sm:$0xff]  }
  0x38   :  { %v650_v18 = vld [vmem:[#allocation8 + $0x38] sm:$0xff]   ;;  %v651_v19 = vld [vmem:[#allocation8 + $0x30] sm:$0xff]   ;;  %v652_v20 = vld [vmem:[#allocation8 + $0x28] sm:$0xff]   ;;  %p745_p9 = por %p744_p8, %p743_p7 }
  0x39   :  { %566 = vmatpush3.bf16.msra.mxu0 %v634_v2  ;;  %586 = vmatpush3.bf16.msra.mxu1 %v643_v6  ;;  %v653_v21 = vld [vmem:[#allocation8 + $0x20] sm:$0xff]   ;;  %v654_v22 = vld [vmem:[#allocation8 + $0x18] sm:$0xff]   ;;  %v655_v33 = vld [vmem:[#allocation8 + $0x10] sm:$0xff]  }
  0x3a   :  { %567 = vmatprep.subr.bf16.mxu0 %v794_v0  ;;  %587 = vmatprep.subr.bf16.mxu1 %v794_v0  ;;  %v490_v23 = vld [vmem:[%s920_s2] ss:$0 sm:$0xff]  ;;  %v656_v34 = vld [vmem:[#allocation8 + $0x8] sm:$0xff]   ;;  %v657_v35 = vld [vmem:[#allocation8] sm:$0xff]   ;;  %p746_p10 = pnand %p745_p9, %p739_p6 }
  0x3b   :  { %v500_v36 = vld [vmem:[%s922_s4] ss:$0 sm:$0xff] }
  0x3d   :  { %568 = vmatpush3.bf16.msra.mxu0 %v635_v3  ;;  %588 = vmatpush3.bf16.msra.mxu1 %v644_v8 }
  0x3e   :  { %569 = vmatprep.subr.bf16.mxu0 %v794_v0  ;;  %589 = vmatprep.subr.bf16.mxu1 %v794_v0 }
  0x41   :  { %570 = vmatpush3.bf16.msra.mxu0 %v636_v5  ;;  %590 = vmatpush3.bf16.msra.mxu1 %v645_v10 }
  0x42   :  { %571 = vmatprep.subr.bf16.mxu0 %v794_v0  ;;  %591 = vmatprep.subr.bf16.mxu1 %v794_v0 }
  0x45   :  { %572 = vmatpush3.bf16.msra.mxu0 %v637_v7  ;;  %592 = vmatpush3.bf16.msra.mxu1 %v646_v12 }
  0x46   :  { %573 = vmatprep.subr.bf16.mxu0 %v794_v0  ;;  %593 = vmatprep.subr.bf16.mxu1 %v794_v0 }
  0x49   :  { %574 = vmatpush3.bf16.msra.mxu0 %v638_v9  ;;  %594 = vmatpush3.bf16.msra.mxu1 %v647_v15 }
  0x4a   :  { %575 = vmatprep.subr.bf16.mxu0 %v794_v0  ;;  %595 = vmatprep.subr.bf16.mxu1 %v794_v0 }
  0x4d   :  { %576 = vmatpush3.bf16.msra.mxu0 %v639_v11  ;;  %596 = vmatpush3.bf16.msra.mxu1 %v648_v16 }
  0x4e   :  { %577 = vmatprep.subr.bf16.mxu0 %v794_v0  ;;  %597 = vmatprep.subr.bf16.mxu1 %v794_v0 }
  0x51   :  { %578 = vmatpush3.bf16.msra.mxu0 %v640_v13  ;;  %598 = vmatpush3.bf16.msra.mxu1 %v649_v17 }
  0x52   :  { %603 = vmatprep.subr.bf16.mxu0 %v794_v0 }
  0x54   :  { %580 = vmatmul.mubr.bf16.vlgmr.msra.gmra.mxu0 %v641_v14 }
  0x55   :  { %619 = vmatprep.mubr.msk.bf16.mxu0 %vm795_vm0, %v794_v0  ;;  %604 = vmatpush3.bf16.msra.mxu0 %v650_v18 }
  0x56   :  { %605 = vmatprep.subr.bf16.mxu0 %v794_v0 }
  0x59   :  { %606 = vmatpush3.bf16.msra.mxu0 %v651_v19 }
  0x5a   :  { %607 = vmatprep.subr.bf16.mxu0 %v794_v0 }
  0x5d   :  { %608 = vmatpush3.bf16.msra.mxu0 %v652_v20 }
  0x5e   :  { %609 = vmatprep.subr.bf16.mxu0 %v794_v0 }
  0x61   :  { %610 = vmatpush3.bf16.msra.mxu0 %v653_v21 }
  0x62   :  { %611 = vmatprep.subr.bf16.mxu0 %v794_v0 }
  0x65   :  { %612 = vmatpush3.bf16.msra.mxu0 %v654_v22 }
  0x66   :  { %613 = vmatprep.subr.bf16.mxu0 %v794_v0 }
  0x69   :  { %614 = vmatpush3.bf16.msra.mxu0 %v655_v33 }
  0x6a   :  { %615 = vmatprep.subr.bf16.mxu0 %v794_v0 }
  0x6d   :  { %616 = vmatpush3.bf16.msra.mxu0 %v656_v34 }
  0x6e   :  { %617 = vmatprep.subr.bf16.mxu0 %v794_v0 }
  0x71   :  { %618 = vmatpush3.bf16.msra.mxu0 %v657_v35 }
 0x114   :  { %v199_v24 = vpop.f32.mrf.mxu0 }
 0x115   :  { %v200_v26 = vadd.f32 %v490_v23, %v199_v24 }
 0x116   :  { %v581_v25 = vpop.f32.mrf.mxu0 }
 0x117   :  { %v206_v30 = vmax.f32 %v200_v26, 0.0 }
 0x118   :  { %v202_v27 = vpop.f32.mrf.mxu0 }
 0x119   :  { %v203_v28 = vadd.f32 %v490_v23, %v202_v27 }
 0x11a   :  { %v582_v29 = vpop.f32.mrf.mxu0 }
 0x11b   :  { %v207_v31 = vmax.f32 %v203_v28, 0.0 }
 0x11d   :  { %v208_v32 = vpack.c.bf16 %v207_v31, %v206_v30 }
 0x11f   :  { %600 = vmatmul.mubr.bf16.vlgmr.msra.gmra.mxu1 %v208_v32 }
 0x1df   :  { %v314_v37 = vpop.f32.mrf.mxu1 }
 0x1e0   :  { %v315_v39 = vadd.f32 %v500_v36, %v314_v37 }
 0x1e1   :  { %v601_v38 = vpop.f32.mrf.mxu1 }
 0x1e2   :  { %v321_v43 = vmax.f32 %v315_v39, 0.0 }
 0x1e3   :  { %v317_v40 = vpop.f32.mrf.mxu1 }
 0x1e4   :  { %v318_v41 = vadd.f32 %v500_v36, %v317_v40 }
 0x1e5   :  { %v602_v42 = vpop.f32.mrf.mxu1 }
 0x1e6   :  { %v322_v44 = vmax.f32 %v318_v41, 0.0 }
 0x1e8   :  { %v323_v45 = vpack.c.bf16 %v322_v44, %v321_v43 }
 0x1ea   :  { %530 = vst [vmem:[#allocation10] sm:$0xff] %v323_v45   ;;  %620 = vmatmul.mubr.bf16.vlgmr.msra.gmra.mxu0 %v323_v45 }
 0x1eb   :  { %749 = shalt.err (!%p746_p10)
}
 0x1ec   :  { %466 = dma.vmem_to_hbm [thread:$0]  %s461_s27, 128, %s925_s7, [#allocation4], %s790_s10, %s790_s10, %s791_s11  }
 0x1ed   :  { %v511_v47 = vld [vmem:[%s924_s6] ss:$0 sm:$0xff]  ;;  %s797_s12 = smov [#allocation11]  }
 0x1ee   :  { %s472_s13 = sshll.u32 %s797_s12, 4  ;;  %s473_s13 = int_to_ptr.vmem [resolvable:$true] %s472_s13 }
 0x1ef   :  { %s758_s14 = scalar_lea.vmem %s473_s13, 128  ;;  %p763_p12 = scmp.lt.s32.totalorder %s473_s13, %s473_s13 }
 0x1f0   :  { %p759_p11 = scmp.ne.s32.totalorder %s473_s13, %s758_s14  ;;  %p764_p13 = scmp.lt.s32.totalorder %s758_s14, %s758_s14 }
 0x1f2   :  { %p765_p0 = por %p764_p13, %p763_p12 }
 0x1f4   :  { %p766_p1 = pnand %p765_p0, %p759_p11 }
 0x2aa   :  { %v438_v46 = vpop.f32.mrf.mxu0 }
 0x2ab   :  { %v439_v50 = vadd.f32 %v511_v47, %v438_v46 }
 0x2ac   :  { %v621_v48 = vpop.f32.mrf.mxu0 }
 0x2ae   :  { %v441_v49 = vpop.f32.mrf.mxu0 }
 0x2af   :  { %v442_v51 = vadd.f32 %v511_v47, %v441_v49 }
 0x2b0   :  { %v622_v52 = vpop.f32.mrf.mxu0 }
 0x2b1   :  { %v534_v53 = vpack.c.bf16 %v442_v51, %v439_v50 }
 0x2b3   :  { %535 = vst [vmem:[#allocation11] sm:$0xff] %v534_v53  }
 0x2b4   :  { %769 = shalt.err (!%p766_p1)
}
 0x2b5   :  { %478 = dma.vmem_to_hbm [thread:$0]  %s473_s13, 128, %s926_s8, [#allocation12], %s790_s10, %s790_s10, %s791_s11  }
 0x2b6   :  { %784 = dma.done.wait [#allocation4], 128  }
 0x2b7   :  { %785 = vsyncadd [#allocation4], 4294967168 }
 0x2b8   :  { %786 = dma.done.wait [#allocation12], 128  }
 0x2b9   :  { %787 = vsyncadd [#allocation12], 4294967168 }
 0x2ba   :  { %485 = vsyncpa [#allocation3], 1 }
 0x2bb   :  { %486 = vsyncpa [#allocation6], 1 }
 0x2bc   :  { %487 = vsyncpa [#allocation9], 1 }
 0x2bd   :  { %488 = vsyncpa [#allocation4], 1 }
 0x2be   :  { %489 = vsyncpa [#allocation12], 1 }

</bundles_post_ra>
